<compile_context>
chip_gen: v7x
topology: tpu7x:2x2x1
jax: 0.10.0
libtpu: 0.0.40
codegen_flags: <defaults>
</compile_context>

<pallas_src>
import functools

import jax
import jax.numpy as jnp
from jax.experimental import pallas as pl
from jax.experimental.pallas import tpu as pltpu


def _round_up(x, m):
    return ((x + m - 1) // m) * m


def _projection_kernel(x_ref, w_ref, b_ref, o_ref):
    # x_ref: (tm, K)  w_ref: (K, tn)  b_ref: (1, tn) f32  o_ref: (tm, tn)
    acc = jnp.dot(x_ref[...], w_ref[...], preferred_element_type=jnp.float32)
    o_ref[...] = (acc + b_ref[...]).astype(o_ref.dtype)


@functools.partial(jax.jit, static_argnames=("tm", "tn", "compute_dtype"))
def projection(x, w, b, *, tm=256, tn=512, compute_dtype=jnp.bfloat16):
    """x: (batch, seq, d_model), w: (d_model, vocab), b: (1, vocab) -> (batch, seq, vocab)."""
    batch, seq, d_model = x.shape
    vocab = w.shape[1]
    n = batch * seq

    # Effective tile sizes (clamped for small problems), keep (8, 128) alignment.
    tm_eff = min(tm, _round_up(n, 8))
    tn_eff = min(tn, _round_up(vocab, 128))

    # Padded problem sizes (lane-dense K and vocab, divisible row/col tiles).
    n_pad = _round_up(n, tm_eff)
    k_pad = _round_up(d_model, 128)
    v_pad = _round_up(vocab, tn_eff)

    x2d = x.reshape(n, d_model)
    x2d = jnp.pad(x2d, ((0, n_pad - n), (0, k_pad - d_model))).astype(compute_dtype)
    w_p = jnp.pad(w, ((0, k_pad - d_model), (0, v_pad - vocab))).astype(compute_dtype)
    b_p = jnp.pad(b, ((0, 0), (0, v_pad - vocab))).astype(jnp.float32)

    grid = (n_pad // tm_eff, v_pad // tn_eff)

    bytes_accessed = (
        x2d.size * x2d.dtype.itemsize
        + w_p.size * w_p.dtype.itemsize
        + b_p.size * b_p.dtype.itemsize
        + n_pad * v_pad * jnp.dtype(x.dtype).itemsize
    )
    cost = pl.CostEstimate(
        flops=2 * n_pad * k_pad * v_pad,
        transcendentals=0,
        bytes_accessed=bytes_accessed,
    )

    out2d = pl.pallas_call(
        _projection_kernel,
        out_shape=jax.ShapeDtypeStruct((n_pad, v_pad), x.dtype),
        grid_spec=pltpu.PrefetchScalarGridSpec(
            num_scalar_prefetch=0,
            grid=grid,
            in_specs=[
                pl.BlockSpec((tm_eff, k_pad), lambda i, j: (i, 0)),   # x row tile
                pl.BlockSpec((k_pad, tn_eff), lambda i, j: (0, j)),   # W column tile
                pl.BlockSpec((1, tn_eff), lambda i, j: (0, j)),       # bias tile
            ],
            out_specs=pl.BlockSpec((tm_eff, tn_eff), lambda i, j: (i, j)),
        ),
        compiler_params=pltpu.CompilerParams(
            dimension_semantics=("parallel", "parallel")),
        cost_estimate=cost,
    )(x2d, w_p, b_p)

    return out2d[:n, :vocab].reshape(batch, seq, vocab)


def init_params(key, d_model, vocab_size, dtype=jnp.float32):
    """Mirror nn.Linear(d_model, vocab_size) init; weight stored pre-transposed."""
    k1, k2 = jax.random.split(key)
    bound = 1.0 / (d_model ** 0.5)
    w = jax.random.uniform(k1, (d_model, vocab_size), dtype, -bound, bound)
    b = jax.random.uniform(k2, (1, vocab_size), dtype, -bound, bound)
    return w, b


if __name__ == "__main__":
    key = jax.random.PRNGKey(0)
    batch, seq, d_model, vocab_size = 2, 8, 32, 100

    kx, kp = jax.random.split(key)
    x = jax.random.normal(kx, (batch, seq, d_model), jnp.float32)
    w, b = init_params(kp, d_model, vocab_size)

    out = projection(x, w, b)
    out = jax.block_until_ready(out)

    # Reference (plain JAX, f32). bf16 MXU path -> loose-but-meaningful tolerance.
    ref = jnp.einsum("bsd,dv->bsv", x, w) + b[0]
    assert out.shape == (batch, seq, vocab_size)
    assert jnp.allclose(out, ref, atol=5e-2, rtol=5e-2), float(
        jnp.max(jnp.abs(out - ref)))

    print("KERNEL_OK")
</pallas_src>

<mosaic_0001>
module attributes {stable_mosaic.version = 11 : i64} {
  func.func @_projection_kernel(%arg0: i32, %arg1: i32, %arg2: memref<16x128xbf16, #tpu.memory_space<vmem>>, %arg3: memref<128x128xbf16, #tpu.memory_space<vmem>>, %arg4: memref<1x128xf32, #tpu.memory_space<vmem>>, %arg5: memref<16x128xf32, #tpu.memory_space<vmem>>) attributes {dimension_semantics = [#tpu.dimension_semantics<parallel>, #tpu.dimension_semantics<parallel>], iteration_bounds = array<i64: 1, 1>, scalar_prefetch = 0 : i64, scratch_operands = 0 : i64, tpu.core_type = #tpu.core_type<tc>, window_params = [{transform_indices = @transform_0, window_bounds = array<i64: 16, 128>}, {transform_indices = @transform_1, window_bounds = array<i64: 128, 128>}, {transform_indices = @transform_2, window_bounds = array<i64: 1, 128>}, {transform_indices = @transform_3, window_bounds = array<i64: 16, 128>}]} {
    %c0 = arith.constant 0 : index
    %c0_0 = arith.constant 0 : index
    %0 = vector.load %arg2[%c0, %c0_0] : memref<16x128xbf16, #tpu.memory_space<vmem>>, vector<16x128xbf16>
    %c0_1 = arith.constant 0 : index
    %c0_2 = arith.constant 0 : index
    %1 = vector.load %arg3[%c0_1, %c0_2] : memref<128x128xbf16, #tpu.memory_space<vmem>>, vector<128x128xbf16>
    %cst = arith.constant dense<0.000000e+00> : vector<16x128xf32>
    %2 = tpu.matmul %0, %1, %cst {dimension_numbers = #tpu.dot_dimension_numbers<[1], [0], [0], [1], [0, 0, 1, 1], [], []>} : vector<16x128xbf16>, vector<128x128xbf16>, vector<16x128xf32> -> vector<16x128xf32>
    %c0_3 = arith.constant 0 : index
    %c0_4 = arith.constant 0 : index
    %3 = vector.load %arg4[%c0_3, %c0_4] : memref<1x128xf32, #tpu.memory_space<vmem>>, vector<1x128xf32>
    %4 = vector.broadcast %3 : vector<1x128xf32> to vector<16x128xf32>
    %5 = arith.addf %2, %4 : vector<16x128xf32>
    %c0_5 = arith.constant 0 : index
    %c0_6 = arith.constant 0 : index
    %6 = vector.load %arg5[%c0_5, %c0_6] : memref<16x128xf32, #tpu.memory_space<vmem>>, vector<16x128xf32>
    tpu.vector_store %arg5[%c0_5, %c0_6], %5 {strides = array<i32>} : memref<16x128xf32, #tpu.memory_space<vmem>>, vector<16x128xf32>,
    return
  }
  func.func @transform_0(%arg0: i32, %arg1: i32) -> (i32, i32) {
    %c0_i32 = arith.constant 0 : i32
    %c0_i32_0 = arith.constant 0 : i32
    return %arg0, %c0_i32 : i32, i32
  }
  func.func @transform_1(%arg0: i32, %arg1: i32) -> (i32, i32) {
    %c0_i32 = arith.constant 0 : i32
    %c0_i32_0 = arith.constant 0 : i32
    return %c0_i32, %arg1 : i32, i32
  }
  func.func @transform_2(%arg0: i32, %arg1: i32) -> (i32, i32) {
    %c0_i32 = arith.constant 0 : i32
    %c0_i32_0 = arith.constant 0 : i32
    return %c0_i32, %arg1 : i32, i32
  }
  func.func @transform_3(%arg0: i32, %arg1: i32) -> (i32, i32) {
    %c0_i32 = arith.constant 0 : i32
    return %arg0, %arg1 : i32, i32
  }
}

</mosaic_0001>

<bundles_post_ra>
// kernel: projection.1
= control target key start
LH: loop header
LB: loop body
LE: loop exit
PB: predicated region body
PF: predicated region fallthrough
CT: control target
= control target key end

     0   :  { %v191_v0 = vmov 0.0   ;;  %vm192_vm0 = vmmov 0   ;;  %s249_s1 = inlined_call_operand.vmem [shape: bf16[128,128], index: 1, kind: input, shape index: {}]   ;;  %s250_s0 = inlined_call_operand.vmem [shape: bf16[16,128], index: 0, kind: input, shape index: {}]   ;;  %s251_s2 = inlined_call_operand.vmem [shape: f32[1,128], index: 2, kind: input, shape index: {}]   ;;  %s252_s3 = inlined_call_operand.vmem [shape: f32[16,128], index: 3, kind: output, shape index: {}]  }
   0x1   :  { %160 = vmatprep.subr.bf16.mxu0 %v191_v0  ;;  %v182_v1 = vld [vmem:[%s249_s1] sm:$0xff]   ;;  %176 = vmatprep.mubr.msk.bf16.mxu0 %vm192_vm0, %v191_v0  ;;  %v183_v2 = vld [vmem:[%s249_s1 + $0x8] sm:$0xff]   ;;  %v184_v3 = vld [vmem:[%s249_s1 + $0x10] sm:$0xff]  }
   0x2   :  { %161 = vmatpush3.bf16.msra.mxu0 %v182_v1  ;;  %v185_v4 = vld [vmem:[%s249_s1 + $0x18] sm:$0xff]   ;;  %v186_v5 = vld [vmem:[%s249_s1 + $0x20] sm:$0xff]   ;;  %v187_v6 = vld [vmem:[%s249_s1 + $0x28] sm:$0xff]  }
   0x3   :  { %162 = vmatprep.subr.bf16.mxu0 %v191_v0  ;;  %v188_v7 = vld [vmem:[%s249_s1 + $0x30] sm:$0xff]   ;;  %v189_v8 = vld [vmem:[%s249_s1 + $0x38] sm:$0xff]   ;;  %v190_v9 = vld [vmem:[%s250_s0] sm:$0xff]  }
   0x4   :  { %v141_v10 = vld [vmem:[%s251_s2] ss:$0 sm:$0xff] }
   0x6   :  { %163 = vmatpush3.bf16.msra.mxu0 %v183_v2 }
   0x7   :  { %164 = vmatprep.subr.bf16.mxu0 %v191_v0 }
   0xa   :  { %165 = vmatpush3.bf16.msra.mxu0 %v184_v3 }
   0xb   :  { %166 = vmatprep.subr.bf16.mxu0 %v191_v0 }
   0xe   :  { %167 = vmatpush3.bf16.msra.mxu0 %v185_v4 }
   0xf   :  { %168 = vmatprep.subr.bf16.mxu0 %v191_v0 }
  0x12   :  { %169 = vmatpush3.bf16.msra.mxu0 %v186_v5 }
  0x13   :  { %170 = vmatprep.subr.bf16.mxu0 %v191_v0 }
  0x16   :  { %171 = vmatpush3.bf16.msra.mxu0 %v187_v6 }
  0x17   :  { %172 = vmatprep.subr.bf16.mxu0 %v191_v0 }
  0x1a   :  { %173 = vmatpush3.bf16.msra.mxu0 %v188_v7 }
  0x1b   :  { %174 = vmatprep.subr.bf16.mxu0 %v191_v0 }
  0x1e   :  { %175 = vmatpush3.bf16.msra.mxu0 %v189_v8 }
  0x21   :  { %177 = vmatmul.mubr.bf16.vlgmr.msra.gmra.mrb[0].mxu0 %v190_v9 }
  0xf4   :  { %v128_v11 = vpop.f32.mrb[0].mxu0 }
  0xf5   :  { %v129_v12 = vadd.f32 %v141_v10, %v128_v11  ;;  %v178_v13 = vpop.f32.mrb[1].mxu0 }
  0xf6   :  { %v131_v14 = vpop.f32.mrb[2].mxu0 }
  0xf7   :  { %135 = vst [vmem:[%s252_s3] sm:$0xff] %v129_v12  ;;  %v132_v15 = vadd.f32 %v141_v10, %v131_v14  ;;  %v179_v16 = vpop.f32.mrb[3].mxu0 }
  0xf9   :  { %136 = vst [vmem:[%s252_s3 + $0x8] sm:$0xff] %v132_v15 }

</bundles_post_ra>
